<compile_context>
chip_gen: v7x
topology: tpu7x:2x2x1
jax: 0.10.0
libtpu: 0.0.40
codegen_flags: <defaults>
</compile_context>

<pallas_src>
import functools
import math

import jax
import jax.numpy as jnp
from jax import lax
from jax.experimental import pallas as pl
from jax.experimental.pallas import tpu as pltpu


# ----------------------------------------------------------------------------
# Generation-dependent VMEM budgets
# ----------------------------------------------------------------------------
def _vmem_budgets():
    """Returns (vmem_limit_bytes, per-step VMEM budget) for this TPU generation."""
    cap = 64 * 1024 * 1024  # conservative fallback (v7x-sized)
    try:
        info = pltpu.get_tpu_info()
        c = getattr(info, "vmem_capacity_bytes", None)
        if c:
            cap = int(c)
    except Exception:
        pass
    # Leave headroom for Mosaic internal scratch / double buffering slack.
    limit = max(32 * 1024 * 1024, min(int(cap * 3 // 4), 96 * 1024 * 1024))
    step_budget = limit // 3
    return limit, step_budget


# ----------------------------------------------------------------------------
# Linear projection kernel (row-tiled, pipelined, weights resident)
# ----------------------------------------------------------------------------
def _linear_kernel(x_ref, w_ref, b_ref, o_ref):
    # x: (TILE_N, Din), w: (Din, Dout), b: (1, Dout)
    o_ref[...] = (
        jnp.dot(x_ref[...], w_ref[...], preferred_element_type=jnp.float32)
        + b_ref[...]
    ).astype(o_ref.dtype)


def pallas_linear(x, w, b, *, tile_n=None):
    """y = x @ w + b, tiled over rows so HBM traffic is double-buffered."""
    N, Din = x.shape
    Dout = w.shape[1]
    vmem_limit, step_budget = _vmem_budgets()

    if tile_n is None:
        tile_n = 1024  # measured ~86% of HBM roofline for mem-bound tiles

    def footprint(t):
        # resident weight + bias, double-buffered x/out row blocks (f32)
        return 4 * (Din * Dout + Dout) + 2 * 4 * t * (Din + Dout)

    while tile_n > 8 and footprint(tile_n) > step_budget:
        tile_n //= 2

    if tile_n >= N:
        tile_n = N                          # full dim is always a legal block
    else:
        tile_n = max(8, (tile_n // 8) * 8)  # keep sublane-aligned tiles

    grid = (pl.cdiv(N, tile_n),)
    flops = 2 * N * Din * Dout
    bytes_accessed = 4 * (N * Din + Din * Dout + Dout + N * Dout)

    return pl.pallas_call(
        _linear_kernel,
        out_shape=jax.ShapeDtypeStruct((N, Dout), x.dtype),
        grid=grid,
        in_specs=[
            pl.BlockSpec((tile_n, Din), lambda i: (i, 0)),
            pl.BlockSpec((Din, Dout), lambda i: (0, 0)),
            pl.BlockSpec((1, Dout), lambda i: (0, 0)),
        ],
        out_specs=pl.BlockSpec((tile_n, Dout), lambda i: (i, 0)),
        compiler_params=pltpu.CompilerParams(
            dimension_semantics=("parallel",),
            vmem_limit_bytes=vmem_limit,
        ),
        cost_estimate=pl.CostEstimate(
            flops=flops, transcendentals=0, bytes_accessed=bytes_accessed
        ),
    )(x, w, b.reshape(1, Dout))


# ----------------------------------------------------------------------------
# Full attention kernel (G heads x Lq query-block per grid step)
# ----------------------------------------------------------------------------
def _attention_kernel(q_ref, k_ref, v_ref, o_ref, *attn_refs, scale):
    # q: (G, Lq, E), k: (G, S, E), v: (G, S, D) for the current tile.
    # Fold 1/sqrt(E) into q (small tensor) instead of scaling (G, Lq, S) scores.
    q = (q_ref[...] * scale).astype(jnp.bfloat16)
    k = k_ref[...].astype(jnp.bfloat16)
    v = v_ref[...]
    if v.dtype == jnp.float32:
        v = v.astype(jnp.bfloat16)

    # scores[g, l, s] = sum_e q[g,l,e] * k[g,s,e]  -- bf16 MXU, f32 accumulate.
    s = lax.dot_general(
        q, k,
        dimension_numbers=(((2,), (2,)), ((0,), (0,))),
        preferred_element_type=jnp.float32,
    )                                                     # (G, Lq, S) f32

    m = jnp.max(s, axis=-1, keepdims=True)
    p = jnp.exp(s - m)                                    # unnormalized probs
    denom = jnp.sum(p, axis=-1, keepdims=True)
    r = pl.reciprocal(denom, approx=True)                 # EUP slot (cheap)
    r = r * (2.0 - denom * r)                             # one Newton step

    # PV matmul on unnormalized probs; normalize afterwards on the (G,Lq,D)
    # result (S/D-fold fewer VALU multiplies than normalizing p).
    pv = lax.dot_general(
        p.astype(jnp.bfloat16), v,
        dimension_numbers=(((2,), (1,)), ((0,), (0,))),
        preferred_element_type=jnp.float32,
    )                                                     # (G, Lq, D) f32
    o_ref[...] = (pv * r).astype(o_ref.dtype)

    if attn_refs:  # only materialize normalized probs when actually requested
        attn_refs[0][...] = (p * r).astype(attn_refs[0].dtype)


def _pick_attention_tiling(bh, L, S, E, D, output_attention, step_budget):
    """Pick (head-group G, query-block Lq) so the per-step VMEM footprint stays
    under budget while keeping >=2 (ideally even) grid steps for v7x megacore."""

    def footprint(g, lq):
        # double-buffered f32 in/out blocks + bf16 attn-map block
        inout = 2 * 4 * (g * lq * E + g * S * E + g * S * D + g * lq * D)
        if output_attention:
            inout += 2 * 2 * g * lq * S
        # f32 s/p (+exp temp) and bf16 copies of q/k/p
        interm = 4 * 3 * g * lq * S + 2 * g * (lq * S + lq * E + S * E)
        return inout + interm

    # Query-block size: prefer full L; else the largest multiple-of-8 divisor
    # that fits. (S-axis online-softmax tiling left as TODO below.)
    lq = L
    if footprint(1, L) > step_budget and L % 8 == 0:
        lq = 8
        for d in range(L - 8, 7, -8):
            if L % d == 0 and footprint(1, d) <= step_budget:
                lq = d
                break
    # TODO(synk): for very long S even (1, 8, S) may exceed budget; an online
    # softmax over S-tiles would bound that regime.

    candidates = [g for g in range(1, bh + 1)
                  if bh % g == 0 and footprint(g, lq) <= step_budget]
    if not candidates:
        candidates = [1]
    l_steps = max(1, L // lq)

    best = None
    for g in candidates:
        n = (bh // g) * l_steps
        good = (n >= 2 and n % 2 == 0)   # keep both v7x TCs busy
        key = (good, g)
        if best is None or key > best[0]:
            best = (key, g)
    return best[1], lq


def pallas_full_attention(q, k, v, *, output_attention=True,
                          attn_dtype=jnp.bfloat16):
    """q: (B, L, H, E), k: (B, S, H, E), v: (B, S, H, D).
    Returns (out (B, L, H, D), attn (B, H, L, S) in attn_dtype, or None)."""
    B, L, H, E = q.shape
    S = k.shape[1]
    D = v.shape[-1]
    scale = 1.0 / math.sqrt(E)
    vmem_limit, step_budget = _vmem_budgets()

    # TODO(synk): the head transposes below are XLA-side HBM copies; folding the
    # head axis into BlockSpec index_maps would need sub-(8,128) lane slicing of
    # the head axis plus in-kernel relayouts, so the proven layout is kept.
    qh = q.transpose(0, 2, 1, 3).reshape(B * H, L, E)
    kh = k.transpose(0, 2, 1, 3).reshape(B * H, S, E)
    vh = v.transpose(0, 2, 1, 3).reshape(B * H, S, D)

    BH = B * H
    G, Lq = _pick_attention_tiling(BH, L, S, E, D, output_attention, step_budget)
    grid = (BH // G, L // Lq)

    in_specs = [
        pl.BlockSpec((G, Lq, E), lambda i, j: (i, j, 0)),
        pl.BlockSpec((G, S, E), lambda i, j: (i, 0, 0)),
        pl.BlockSpec((G, S, D), lambda i, j: (i, 0, 0)),
    ]
    if output_attention:
        out_shape = (
            jax.ShapeDtypeStruct((BH, L, D), q.dtype),
            jax.ShapeDtypeStruct((BH, L, S), attn_dtype),
        )
        out_specs = (
            pl.BlockSpec((G, Lq, D), lambda i, j: (i, j, 0)),
            pl.BlockSpec((G, Lq, S), lambda i, j: (i, j, 0)),
        )
    else:
        out_shape = jax.ShapeDtypeStruct((BH, L, D), q.dtype)
        out_specs = pl.BlockSpec((G, Lq, D), lambda i, j: (i, j, 0))

    flops = 2 * BH * L * S * (E + D)
    bytes_accessed = (4 * (BH * L * E + BH * S * E + BH * S * D + BH * L * D)
                      + (2 * BH * L * S if output_attention else 0))

    kernel = functools.partial(_attention_kernel, scale=scale)
    res = pl.pallas_call(
        kernel,
        out_shape=out_shape,
        grid=grid,
        in_specs=in_specs,
        out_specs=out_specs,
        compiler_params=pltpu.CompilerParams(
            dimension_semantics=("parallel", "parallel"),
            vmem_limit_bytes=vmem_limit,
        ),
        cost_estimate=pl.CostEstimate(
            flops=flops, transcendentals=BH * L * S, bytes_accessed=bytes_accessed
        ),
    )(qh, kh, vh)

    if output_attention:
        out, attn = res
        attn = attn.reshape(B, H, L, S)
    else:
        out, attn = res, None

    # TODO(synk): lane-dense (L, H*D) kernel-side output layout would avoid this
    # XLA transpose and the D=64 masked stores, but needs an in-kernel relayout.
    out = out.reshape(B, H, L, D).transpose(0, 2, 1, 3)   # (B, L, H, D)
    return out, attn


# ----------------------------------------------------------------------------
# Module glue (plain JAX): parameters, positional embedding, forward
# ----------------------------------------------------------------------------
def sinusoidal_position_embedding(L, d_model, dtype=jnp.float32):
    """Matches PositionalEmbedding(d_model): (1, L, d_model)."""
    position = jnp.arange(L, dtype=jnp.float32)[:, None]
    div_term = jnp.exp(
        jnp.arange(0, d_model, 2, dtype=jnp.float32) * (-math.log(10000.0) / d_model)
    )
    pe = jnp.zeros((L, d_model), dtype=jnp.float32)
    pe = pe.at[:, 0::2].set(jnp.sin(position * div_term))
    pe = pe.at[:, 1::2].set(jnp.cos(position * div_term))
    return pe[None].astype(dtype)


def init_attention_layer_params(key, d_model, n_heads, d_keys=None, d_values=None):
    d_keys = d_keys or d_model // n_heads
    d_values = d_values or d_model // n_heads
    ks = jax.random.split(key, 8)

    def lin(kw, kb, fan_in, fan_out):
        bound = 1.0 / math.sqrt(fan_in)
        w = jax.random.uniform(kw, (fan_in, fan_out), jnp.float32, -bound, bound)
        b = jax.random.uniform(kb, (fan_out,), jnp.float32, -bound, bound)
        return w, b

    return {
        "q": lin(ks[0], ks[1], d_model, d_keys * n_heads),
        "k": lin(ks[2], ks[3], d_model, d_keys * n_heads),
        "v": lin(ks[4], ks[5], d_model, d_values * n_heads),
        "o": lin(ks[6], ks[7], d_values * n_heads, d_model),
    }


def attention_layer_forward(params, n_heads, queries, keys, values,
                            attn_mask=None, tau=None, delta=None,
                            pi=None, pis=None, init_sim_m=None, use_rot=False,
                            output_attention=True):
    # TODO(synk): attn_mask / tau / delta / pis / init_sim_m are unused by the
    # plain FullAttention core implemented here (same as mask_flag=False path).
    B, L, d_model = queries.shape
    _, S, _ = keys.shape
    H = n_heads

    if use_rot:
        pe = sinusoidal_position_embedding(L, d_model, queries.dtype)
        queries = queries + pi[0] * pe
        keys = keys + pi[1] * pe
        values = values + pi[2] * pe

    wq, bq = params["q"]
    wk, bk = params["k"]
    wv, bv = params["v"]
    wo, bo = params["o"]
    Hdk = wq.shape[1]

    # NOTE: identity-based aliasing detection is a perf heuristic only; under
    # jit with separate tracers it falls back to the 3-projection path.
    same_qkv = (queries is keys) and (keys is values)
    same_kv = keys is values
    q_in = queries.reshape(B * L, d_model)

    if same_qkv:
        # Self-attention: one fused projection (single HBM read of x, wider N).
        w_qkv = jnp.concatenate([wq, wk, wv], axis=1)
        b_qkv = jnp.concatenate([bq, bk, bv], axis=0)
        qkv = pallas_linear(q_in, w_qkv, b_qkv)
        q = qkv[:, :Hdk].reshape(B, L, H, -1)
        k = qkv[:, Hdk:2 * Hdk].reshape(B, S, H, -1)
        v = qkv[:, 2 * Hdk:].reshape(B, S, H, -1)
    elif same_kv:
        q = pallas_linear(q_in, wq, bq).reshape(B, L, H, -1)
        kv_in = keys.reshape(B * S, d_model)
        w_kv = jnp.concatenate([wk, wv], axis=1)
        b_kv = jnp.concatenate([bk, bv], axis=0)
        kv = pallas_linear(kv_in, w_kv, b_kv)
        k = kv[:, :Hdk].reshape(B, S, H, -1)
        v = kv[:, Hdk:].reshape(B, S, H, -1)
    else:
        q = pallas_linear(q_in, wq, bq).reshape(B, L, H, -1)
        k = pallas_linear(keys.reshape(B * S, d_model), wk, bk).reshape(B, S, H, -1)
        v = pallas_linear(values.reshape(B * S, d_model), wv, bv).reshape(B, S, H, -1)

    out, attn = pallas_full_attention(q, k, v, output_attention=output_attention)
    out = out.reshape(B * L, -1)
    out = pallas_linear(out, wo, bo).reshape(B, L, d_model)
    return out, attn


# ----------------------------------------------------------------------------
# Reference (plain JAX) for a sanity check
# ----------------------------------------------------------------------------
def reference_forward(params, n_heads, queries, keys, values):
    B, L, d_model = queries.shape
    _, S, _ = keys.shape
    H = n_heads
    wq, bq = params["q"]
    wk, bk = params["k"]
    wv, bv = params["v"]
    wo, bo = params["o"]
    q = (queries @ wq + bq).reshape(B, L, H, -1)
    k = (keys @ wk + bk).reshape(B, S, H, -1)
    v = (values @ wv + bv).reshape(B, S, H, -1)
    E = q.shape[-1]
    scores = jnp.einsum("blhe,bshe->bhls", q, k) / math.sqrt(E)
    attn = jax.nn.softmax(scores, axis=-1)
    out = jnp.einsum("bhls,bshd->blhd", attn, v).reshape(B, L, -1)
    return out @ wo + bo, attn


if __name__ == "__main__":
    B, L, S, d_model, n_heads = 2, 8, 8, 32, 4

    key = jax.random.PRNGKey(0)
    kq, kk, kv, kp = jax.random.split(key, 4)
    queries = jax.random.normal(kq, (B, L, d_model), jnp.float32)
    keys_in = jax.random.normal(kk, (B, S, d_model), jnp.float32)
    values_in = jax.random.normal(kv, (B, S, d_model), jnp.float32)
    params = init_attention_layer_params(kp, d_model, n_heads)

    # bf16 MXU feeds -> compare at looser tolerances than the f32 version.
    TOL = dict(atol=2e-2, rtol=2e-2)

    # 1) Self-attention (fused QKV projection path).
    out1, attn1 = attention_layer_forward(params, n_heads, queries, queries, queries)
    out1 = jax.block_until_ready(out1)
    attn1 = jax.block_until_ready(attn1)
    r_out1, r_attn1 = reference_forward(params, n_heads, queries, queries, queries)
    assert out1.shape == (B, L, d_model) and attn1.shape == (B, n_heads, L, L)
    assert jnp.allclose(out1, r_out1, **TOL)
    assert jnp.allclose(attn1.astype(jnp.float32), r_attn1, **TOL)

    # 2) Cross-attention with shared key/value input (fused KV path).
    out2, attn2 = attention_layer_forward(params, n_heads, queries, keys_in, keys_in)
    out2 = jax.block_until_ready(out2)
    r_out2, r_attn2 = reference_forward(params, n_heads, queries, keys_in, keys_in)
    assert jnp.allclose(out2, r_out2, **TOL)
    assert jnp.allclose(attn2.astype(jnp.float32), r_attn2, **TOL)

    # 3) Fully separate inputs (3 projections) + no attention-map output.
    out3, attn3 = attention_layer_forward(params, n_heads, queries, keys_in, values_in,
                                          output_attention=False)
    out3 = jax.block_until_ready(out3)
    r_out3, _ = reference_forward(params, n_heads, queries, keys_in, values_in)
    assert attn3 is None
    assert jnp.allclose(out3, r_out3, **TOL)

    print("KERNEL_OK")
</pallas_src>

<mosaic_0001>
module attributes {stable_mosaic.version = 11 : i64} {
  func.func @_linear_kernel(%arg0: i32, %arg1: memref<16x32xf32, #tpu.memory_space<vmem>>, %arg2: memref<32x96xf32, #tpu.memory_space<vmem>>, %arg3: memref<1x96xf32, #tpu.memory_space<vmem>>, %arg4: memref<16x96xf32, #tpu.memory_space<vmem>>) attributes {dimension_semantics = [#tpu.dimension_semantics<parallel>], iteration_bounds = array<i64: 1>, scalar_prefetch = 0 : i64, scratch_operands = 0 : i64, tpu.core_type = #tpu.core_type<tc>, window_params = [{transform_indices = @transform_0, window_bounds = array<i64: 16, 32>}, {pipeline_mode = #tpu.pipeline_mode<synchronous>, transform_indices = @transform_1, window_bounds = array<i64: 32, 96>}, {pipeline_mode = #tpu.pipeline_mode<synchronous>, transform_indices = @transform_2, window_bounds = array<i64: 1, 96>}, {transform_indices = @transform_3, window_bounds = array<i64: 16, 96>}]} {
    %c0 = arith.constant 0 : index
    %c0_0 = arith.constant 0 : index
    %0 = vector.load %arg1[%c0, %c0_0] : memref<16x32xf32, #tpu.memory_space<vmem>>, vector<16x32xf32>
    %c0_1 = arith.constant 0 : index
    %c0_2 = arith.constant 0 : index
    %1 = vector.load %arg2[%c0_1, %c0_2] : memref<32x96xf32, #tpu.memory_space<vmem>>, vector<32x96xf32>
    %cst = arith.constant dense<0.000000e+00> : vector<16x96xf32>
    %2 = tpu.matmul %0, %1, %cst {dimension_numbers = #tpu.dot_dimension_numbers<[1], [0], [0], [1], [0, 0, 1, 1], [], []>} : vector<16x32xf32>, vector<32x96xf32>, vector<16x96xf32> -> vector<16x96xf32>
    %c0_3 = arith.constant 0 : index
    %c0_4 = arith.constant 0 : index
    %3 = vector.load %arg3[%c0_3, %c0_4] : memref<1x96xf32, #tpu.memory_space<vmem>>, vector<1x96xf32>
    %4 = vector.broadcast %3 : vector<1x96xf32> to vector<16x96xf32>
    %5 = arith.addf %2, %4 : vector<16x96xf32>
    %c0_5 = arith.constant 0 : index
    %c0_6 = arith.constant 0 : index
    %6 = vector.load %arg4[%c0_5, %c0_6] : memref<16x96xf32, #tpu.memory_space<vmem>>, vector<16x96xf32>
    tpu.vector_store %arg4[%c0_5, %c0_6], %5 {strides = array<i32>} : memref<16x96xf32, #tpu.memory_space<vmem>>, vector<16x96xf32>,
    return
  }
  func.func @transform_0(%arg0: i32) -> (i32, i32) {
    %c0_i32 = arith.constant 0 : i32
    %c0_i32_0 = arith.constant 0 : i32
    return %arg0, %c0_i32 : i32, i32
  }
  func.func @transform_1(%arg0: i32) -> (i32, i32) {
    %c0_i32 = arith.constant 0 : i32
    %c0_i32_0 = arith.constant 0 : i32
    %c0_i32_1 = arith.constant 0 : i32
    return %c0_i32, %c0_i32_0 : i32, i32
  }
  func.func @transform_2(%arg0: i32) -> (i32, i32) {
    %c0_i32 = arith.constant 0 : i32
    %c0_i32_0 = arith.constant 0 : i32
    %c0_i32_1 = arith.constant 0 : i32
    return %c0_i32, %c0_i32_0 : i32, i32
  }
  func.func @transform_3(%arg0: i32) -> (i32, i32) {
    %c0_i32 = arith.constant 0 : i32
    %c0_i32_0 = arith.constant 0 : i32
    return %arg0, %c0_i32 : i32, i32
  }
}

</mosaic_0001>

<bundles_post_ra>
// kernel: tpu_custom_call.1
= control target key start
LH: loop header
LB: loop body
LE: loop exit
PB: predicated region body
PF: predicated region fallthrough
CT: control target
= control target key end

     0   :  { %8 = vsyncpa [#allocation3], 0  ;;  %s337_s0 = inlined_call_operand.hbm [shape: f32[16,32], index: 0, kind: input, shape index: {}]   ;;  %s338_s1 = inlined_call_operand.hbm [shape: f32[32,96], index: 1, kind: input, shape index: {}]   ;;  %s339_s2 = inlined_call_operand.vmem [shape: f32[1,96], index: 2, kind: input, shape index: {}]   ;;  %s340_s3 = inlined_call_operand.hbm [shape: f32[16,96], index: 3, kind: output, shape index: {}]  }
   0x1   :  { %9 = vsyncpa [#allocation6], 0 }
   0x2   :  { %10 = vsyncpa [#allocation4], 0  ;;  %s264_s12 = smov [#allocation2]   ;;  %s192_s16 = scalar_lea.hbm %s337_s0, 256 }
   0x3   :  { %s16_s13 = sshll.u32 %s264_s12, 4  ;;  %p193_p0 = scmp.ne.s32.totalorder %s337_s0, %s192_s16  ;;  %s17_s13 = int_to_ptr.vmem [resolvable:$true] %s16_s13 }
   0x4   :  { %p196_p1 = scmp.lt.u32.totalorder %s192_s16, %s337_s0 }
   0x6   :  { %p198_p2 = pnand %p196_p1, %p193_p0 }
   0x8   :  { %201 = shalt.err (!%p198_p2)
}
   0x9   :  { %s202_s21 = scalar_lea.vmem %s17_s13, 256  ;;  %p207_p4 = scmp.lt.s32.totalorder %s17_s13, %s17_s13 }
   0xa   :  { %p203_p3 = scmp.ne.s32.totalorder %s17_s13, %s202_s21  ;;  %p208_p5 = scmp.lt.s32.totalorder %s202_s21, %s202_s21 }
   0xc   :  { %p209_p6 = por %p208_p5, %p207_p4 }
   0xe   :  { %p210_p7 = pnand %p209_p6, %p203_p3 }
  0x10   :  { %213 = shalt.err (!%p210_p7)
}
  0x11   :  { %s265_s22 = smov 128   ;;  %s266_s23 = smov 8  }
  0x12   :  { %22 = dma.hbm_to_vmem [thread:$0]  %s337_s0, 256, %s17_s13, [#allocation3], %s265_s22, %s265_s22, %s266_s23  }
  0x13   :  { %s267_s26 = smov [#allocation5]   ;;  %s214_s30 = scalar_lea.hbm %s338_s1, 512 }
  0x14   :  { %s28_s27 = sshll.u32 %s267_s26, 4  ;;  %p215_p8 = scmp.ne.s32.totalorder %s338_s1, %s214_s30  ;;  %s29_s27 = int_to_ptr.vmem [resolvable:$true] %s28_s27 }
  0x15   :  { %p218_p9 = scmp.lt.u32.totalorder %s214_s30, %s338_s1 }
  0x17   :  { %p220_p10 = pnand %p218_p9, %p215_p8 }
  0x19   :  { %223 = shalt.err (!%p220_p10)
}
  0x1a   :  { %s224_s8 = scalar_lea.vmem %s29_s27, 512  ;;  %p229_p12 = scmp.lt.s32.totalorder %s29_s27, %s29_s27 }
  0x1b   :  { %p225_p11 = scmp.ne.s32.totalorder %s29_s27, %s224_s8  ;;  %p230_p13 = scmp.lt.s32.totalorder %s224_s8, %s224_s8 }
  0x1d   :  { %p231_p0 = por %p230_p13, %p229_p12 }
  0x1f   :  { %p232_p1 = pnand %p231_p0, %p225_p11 }
  0x21   :  { %235 = shalt.err (!%p232_p1)
}
  0x22   :  { %34 = dma.hbm_to_vmem [thread:$0]  %s338_s1, 512, %s29_s27, [#allocation6], %s265_s22, %s265_s22, %s266_s23  }
  0x23   :  { %258 = dma.done.wait [#allocation3], 256  }
  0x24   :  { %259 = vsyncadd [#allocation3], 4294967040 }
  0x25   :  { %260 = dma.done.wait [#allocation6], 512  }
  0x26   :  { %261 = vsyncadd [#allocation6], 4294966784  ;;  %vm56_vm0 = vcmask 261120   ;;  %v45_v0 = vld [vmem:[#allocation5] sm:$0xff]  ;;  %v46_v1 = vld [vmem:[#allocation5 + $0x8] sm:$0xff]  ;;  %s268_s11 = smov [#allocation7]  }
  0x27   :  { %v47_v2 = vld [vmem:[#allocation5 + $0x10] sm:$0xff]  ;;  %v179_v3 = vpack.c.bf16 %v46_v1, %v45_v0  ;;  %v48_v4 = vld [vmem:[#allocation5 + $0x18] sm:$0xff]  ;;  %s146_s12 = sshll.u32 %s268_s11, 4  ;;  %vm138_vm1 = vcmask 785408   ;;  %s147_s12 = int_to_ptr.vmem [resolvable:$true] %s146_s12 }
  0x28   :  { %v43_v5 = vld [vmem:[#allocation2] sm:$0xff]  ;;  %v183_v6 = vpack.c.bf16 %v48_v4, %v47_v2  ;;  %v44_v7 = vld [vmem:[#allocation2 + $0x8] sm:$0xff]  ;;  %s236_s13 = scalar_lea.vmem %s147_s12, 256  ;;  %p241_p3 = scmp.lt.s32.totalorder %s147_s12, %s147_s12 }
  0x29   :  { %176 = vmatprep.mubr.msk.f32.mxu0 %vm56_vm0, %v43_v5  ;;  %180 = vmatprep.subr.bf16.mxu0 %v179_v3  ;;  %v159_v8 = vld [vmem:[%s339_s2] ss:$0 sm:$0xff]  ;;  %p237_p2 = scmp.ne.s32.totalorder %s147_s12, %s236_s13  ;;  %p242_p4 = scmp.lt.s32.totalorder %s236_s13, %s236_s13 }
  0x2a   :  { %182 = vmatpush3.bf16.msra.mxu0 %v179_v3 }
  0x2b   :  { %184 = vmatprep.subr.bf16.mxu0 %v183_v6  ;;  %p243_p5 = por %p242_p4, %p241_p3 }
  0x2d   :  { %p244_p6 = pnand %p243_p5, %p237_p2 }
  0x2e   :  { %186 = vmatpush3.bf16.msra.mxu0 %v183_v6 }
  0x31   :  { %177 = vmatmul.mubr.msk.f32.vlgmr.msra.gmra.mrb[0].mxu0 %vm56_vm0, %v44_v7 }
 0x104   :  { %v178_v9 = vpop.f32.mrb[0].mxu0 }
 0x105   :  { %v135_v10 = vadd.f32 %v178_v9, %v159_v8  ;;  %v129_v11 = vpop.f32.mrb[1].mxu0 }
 0x106   :  { %v130_v12 = vadd.f32 %v159_v8, %v129_v11 }
 0x107   :  { %140 = vst.msk [vmem:[#allocation7 + $0x8] sm:$0xff] %vm138_vm1, %v135_v10 }
 0x108   :  { %139 = vst.msk [vmem:[#allocation7] sm:$0xff] %vm138_vm1, %v130_v12 }
 0x109   :  { %247 = shalt.err (!%p244_p6)
}
 0x10a   :  { %s248_s2 = scalar_lea.hbm %s340_s3, 256 }
 0x10b   :  { %p249_p7 = scmp.ne.s32.totalorder %s340_s3, %s248_s2  ;;  %p252_p8 = scmp.lt.u32.totalorder %s248_s2, %s340_s3 }
 0x10d   :  { %p254_p9 = pnand %p252_p8, %p249_p7 }
 0x10f   :  { %257 = shalt.err (!%p254_p9)
}
 0x110   :  { %152 = dma.vmem_to_hbm [thread:$0]  %s147_s12, 256, %s340_s3, [#allocation4], %s265_s22, %s265_s22, %s266_s23  }
 0x111   :  { %262 = dma.done.wait [#allocation4], 256  }
 0x112   :  { %263 = vsyncadd [#allocation4], 4294967040 }
 0x113   :  { %156 = vsyncpa [#allocation3], 1 }
 0x114   :  { %157 = vsyncpa [#allocation6], 1 }
 0x115   :  { %158 = vsyncpa [#allocation4], 1 }

</bundles_post_ra>
